<compile_context>
chip_gen: v6e
topology: v6e:2x2x1
jax: 0.10.0
libtpu: 0.0.40
codegen_flags: <defaults>
</compile_context>

<pallas_src>
import functools

import jax
import jax.numpy as jnp
from jax.experimental import pallas as pl
from jax.experimental.pallas import tpu as pltpu

EPS = 1e-5


def _round_up(x, m):
    return ((x + m - 1) // m) * m


def _vmem_limit_bytes():
    # Size the scoped-VMEM limit per generation: ~75% of physical capacity,
    # capped at 100 MiB (v5e/v6e: 128 MiB, v7x: 64 MiB per TensorCore).
    try:
        cap = pltpu.get_tpu_info().vmem_capacity_bytes
    except Exception:
        cap = 64 * 1024 * 1024
    return int(min(cap * 3 // 4, 100 * 1024 * 1024))


_VMEM_LIMIT = _vmem_limit_bytes()


# ---------------------------------------------------------------------------
# Pallas kernels
# ---------------------------------------------------------------------------
def _matmul_stats_kernel(p_ref, w_ref, y_ref, st_ref):
    """Tiled matmul + per-channel sum / sum-of-squares accumulation.

    p_ref: (tile_m, K_pad) bf16 im2col patches
    w_ref: (K_pad, C_pad)  bf16 weights (resident across the M grid axis)
    y_ref: (tile_m, C_pad) f32 conv output tile
    st_ref: (8, C_pad) f32, constant block index -> resident accumulator.
            row 0 = sum(y), row 1 = sum(y*y); rows 2..7 unused.
    """
    @pl.when(pl.program_id(0) == 0)
    def _():
        st_ref[...] = jnp.zeros_like(st_ref)

    y = jnp.dot(p_ref[...], w_ref[...], preferred_element_type=jnp.float32)
    y_ref[...] = y
    st_ref[0:1, :] += jnp.sum(y, axis=0, keepdims=True)
    st_ref[1:2, :] += jnp.sum(y * y, axis=0, keepdims=True)


def _bn_epilogue_kernel(y_ref, sc_ref, sh_ref, o_ref, *, relu):
    out = y_ref[...] * sc_ref[...] + sh_ref[...]
    if relu:
        out = jnp.maximum(out, 0.0)
    o_ref[...] = out.astype(o_ref.dtype)


def _bn_epilogue_res_kernel(y_ref, sc_ref, sh_ref, r_ref, o_ref, *, relu):
    out = y_ref[...] * sc_ref[...] + sh_ref[...] + r_ref[...]
    if relu:
        out = jnp.maximum(out, 0.0)
    o_ref[...] = out.astype(o_ref.dtype)


def _pool_linear_kernel(f_ref, w_ref, b_ref, o_ref):
    # f_ref: (N_pad, HW, C) -> global average pool over HW, then linear.
    e = jnp.mean(f_ref[...], axis=1)                          # (N_pad, C)
    o_ref[...] = (jnp.dot(e, w_ref[...], preferred_element_type=jnp.float32)
                  + b_ref[...]).astype(o_ref.dtype)


# ---------------------------------------------------------------------------
# JAX glue: im2col + pallas_call wrappers
# ---------------------------------------------------------------------------
def _im2col(x, k, stride, pad):
    # x: (N, H, W, C) -> (N*Ho*Wo, k*k*C)
    if pad > 0:
        x = jnp.pad(x, ((0, 0), (pad, pad), (pad, pad), (0, 0)))
    N, Hp, Wp, C = x.shape
    Ho = (Hp - k) // stride + 1
    Wo = (Wp - k) // stride + 1
    cols = []
    for kh in range(k):
        for kw in range(k):
            cols.append(x[:, kh:kh + (Ho - 1) * stride + 1:stride,
                          kw:kw + (Wo - 1) * stride + 1:stride, :])
    patches = jnp.concatenate(cols, axis=-1)                  # (N, Ho, Wo, k*k*C)
    return patches.reshape(N * Ho * Wo, k * k * C), (N, Ho, Wo)


def conv_bn(x, w, gamma, beta, *, stride, relu, residual=None):
    """Fused conv (kxk, pad=(k-1)//2) + BatchNorm(batch stats) [+ residual] [+ ReLU]."""
    k, _, cin, cout = w.shape
    pad = (k - 1) // 2

    # im2col on bf16 activations (halves the materialized HBM traffic).
    patches, (N, Ho, Wo) = _im2col(x.astype(jnp.bfloat16), k, stride, pad)
    M, K = patches.shape

    # Lane-dense / MXU-friendly padding.
    C_pad = _round_up(cout, 128)
    K_pad = _round_up(K, 128)
    tile_m = 256
    if M >= tile_m:
        M_pad = _round_up(M, tile_m)
    else:
        M_pad = _round_up(M, 16)
        tile_m = M_pad
    n_tiles = M_pad // tile_m

    patches_p = jnp.zeros((M_pad, K_pad), jnp.bfloat16).at[:M, :K].set(patches)
    w_p = jnp.zeros((K_pad, C_pad), jnp.bfloat16).at[:K, :cout].set(
        w.reshape(K, cout).astype(jnp.bfloat16))

    # ---- Pass 1: tiled matmul + per-channel sum / sumsq accumulation --------
    y, stats = pl.pallas_call(
        _matmul_stats_kernel,
        out_shape=(jax.ShapeDtypeStruct((M_pad, C_pad), jnp.float32),
                   jax.ShapeDtypeStruct((8, C_pad), jnp.float32)),
        grid=(n_tiles,),
        in_specs=[
            pl.BlockSpec((tile_m, K_pad), lambda i: (i, 0)),
            pl.BlockSpec((K_pad, C_pad), lambda i: (0, 0)),   # weights resident
        ],
        out_specs=(
            pl.BlockSpec((tile_m, C_pad), lambda i: (i, 0)),
            pl.BlockSpec((8, C_pad), lambda i: (0, 0)),       # stats accumulator
        ),
        compiler_params=pltpu.CompilerParams(
            dimension_semantics=("arbitrary",),
            vmem_limit_bytes=_VMEM_LIMIT),
    )(patches_p, w_p)

    # ---- Finalize batch statistics (tiny host-side XLA) ---------------------
    mu = stats[0] / float(M)                                  # (C_pad,)
    var = jnp.maximum(stats[1] / float(M) - mu * mu, 0.0)
    inv = jax.lax.rsqrt(var + EPS)
    gamma_p = jnp.zeros((C_pad,), jnp.float32).at[:cout].set(gamma)
    beta_p = jnp.zeros((C_pad,), jnp.float32).at[:cout].set(beta)
    scale = (gamma_p * inv).reshape(1, C_pad)
    shift = (beta_p - mu * gamma_p * inv).reshape(1, C_pad)

    # ---- Pass 2: tiled normalize + affine [+ residual] [+ ReLU] -------------
    in_specs = [
        pl.BlockSpec((tile_m, C_pad), lambda i: (i, 0)),
        pl.BlockSpec((1, C_pad), lambda i: (0, 0)),
        pl.BlockSpec((1, C_pad), lambda i: (0, 0)),
    ]
    args = [y, scale, shift]
    if residual is None:
        kernel = functools.partial(_bn_epilogue_kernel, relu=relu)
    else:
        res_p = jnp.zeros((M_pad, C_pad), jnp.float32).at[:M, :cout].set(
            residual.reshape(M, cout))
        in_specs.append(pl.BlockSpec((tile_m, C_pad), lambda i: (i, 0)))
        args.append(res_p)
        kernel = functools.partial(_bn_epilogue_res_kernel, relu=relu)

    out = pl.pallas_call(
        kernel,
        out_shape=jax.ShapeDtypeStruct((M_pad, C_pad), jnp.float32),
        grid=(n_tiles,),
        in_specs=in_specs,
        out_specs=pl.BlockSpec((tile_m, C_pad), lambda i: (i, 0)),
        compiler_params=pltpu.CompilerParams(
            dimension_semantics=("parallel",),                # megacore-shardable
            vmem_limit_bytes=_VMEM_LIMIT),
    )(*args)

    return out[:M, :cout].reshape(N, Ho, Wo, cout)


def pool_linear(feat, w, b):
    """adaptive_avg_pool2d((1,1)) + Linear, fused. feat: (N, H, W, C)."""
    N, H, W, C = feat.shape
    HW = H * W
    ncls = w.shape[1]
    NC_pad = _round_up(ncls, 128)
    N_pad = _round_up(N, 8)

    f = jnp.zeros((N_pad, HW, C), jnp.float32).at[:N].set(feat.reshape(N, HW, C))
    w_p = jnp.zeros((C, NC_pad), jnp.float32).at[:, :ncls].set(w)
    b_p = jnp.zeros((1, NC_pad), jnp.float32).at[0, :ncls].set(b)

    out = pl.pallas_call(
        _pool_linear_kernel,
        out_shape=jax.ShapeDtypeStruct((N_pad, NC_pad), jnp.float32),
        grid=(1,),
        in_specs=[
            pl.BlockSpec((N_pad, HW, C), lambda i: (0, 0, 0)),
            pl.BlockSpec((C, NC_pad), lambda i: (0, 0)),
            pl.BlockSpec((1, NC_pad), lambda i: (0, 0)),
        ],
        out_specs=pl.BlockSpec((N_pad, NC_pad), lambda i: (0, 0)),
        compiler_params=pltpu.CompilerParams(
            dimension_semantics=("arbitrary",),
            vmem_limit_bytes=_VMEM_LIMIT),
    )(f, w_p, b_p)
    return out[:N, :ncls]


# ---------------------------------------------------------------------------
# ResNet forward (BasicBlock, expansion=1)
# ---------------------------------------------------------------------------
def basic_block(x, p):
    out = conv_bn(x, p['conv1_w'], p['bn1_g'], p['bn1_b'],
                  stride=p['stride'], relu=True)
    if p['shortcut'] is None:
        sc = x
    else:
        sc = conv_bn(x, p['shortcut']['w'], p['shortcut']['g'], p['shortcut']['b'],
                     stride=p['stride'], relu=False)
    # PyTorch BasicBlock: out = relu(bn2(conv2(out)) + shortcut(x))
    out = conv_bn(out, p['conv2_w'], p['bn2_g'], p['bn2_b'],
                  stride=1, relu=True, residual=sc)
    return out


def resnet_forward(x_nchw, params):
    x = jnp.transpose(x_nchw, (0, 2, 3, 1))                   # NCHW -> NHWC
    out = conv_bn(x, params['conv1_w'], params['bn1_g'], params['bn1_b'],
                  stride=1, relu=True)
    for blk in params['blocks']:
        out = basic_block(out, blk)
    logits = pool_linear(out, params['fc_w'], params['fc_b'])
    return logits


def init_params(key, channels=3, num_classes=10):
    keys = iter(jax.random.split(key, 64))

    def conv_w(cin, cout, k):
        fan_in = k * k * cin
        return jax.random.normal(next(keys), (k, k, cin, cout),
                                 jnp.float32) * (2.0 / fan_in) ** 0.5

    def bn(c):
        return jnp.ones((c,), jnp.float32), jnp.zeros((c,), jnp.float32)

    params = {'conv1_w': conv_w(channels, 64, 3)}
    params['bn1_g'], params['bn1_b'] = bn(64)

    blocks = []
    in_planes = 64
    # num_blocks = [1, 1, 1, 1] (BasicBlock, expansion=1)
    for planes, stride in [(64, 1), (128, 2), (256, 2), (512, 2)]:
        p = {'stride': stride,
             'conv1_w': conv_w(in_planes, planes, 3),
             'conv2_w': conv_w(planes, planes, 3)}
        p['bn1_g'], p['bn1_b'] = bn(planes)
        p['bn2_g'], p['bn2_b'] = bn(planes)
        if stride != 1 or in_planes != planes:
            g, b = bn(planes)
            p['shortcut'] = {'w': conv_w(in_planes, planes, 1), 'g': g, 'b': b}
        else:
            p['shortcut'] = None
        blocks.append(p)
        in_planes = planes
    params['blocks'] = blocks

    params['fc_w'] = jax.random.normal(next(keys), (512, num_classes),
                                       jnp.float32) * 0.02
    params['fc_b'] = jnp.zeros((num_classes,), jnp.float32)
    return params


if __name__ == "__main__":
    key = jax.random.PRNGKey(0)
    pkey, xkey = jax.random.split(key)
    params = init_params(pkey, channels=3, num_classes=10)
    x = jax.random.normal(xkey, (2, 3, 16, 16), jnp.float32)   # NCHW like PyTorch

    logits = resnet_forward(x, params)
    jax.block_until_ready(logits)
    assert logits.shape == (2, 10) and logits.dtype == jnp.float32
    print("KERNEL_OK")
</pallas_src>

<mosaic_0001>
module attributes {stable_mosaic.version = 11 : i64} {
  func.func @_matmul_stats_kernel(%arg0: i32, %arg1: memref<256x128xbf16, #tpu.memory_space<vmem>>, %arg2: memref<128x128xbf16, #tpu.memory_space<vmem>>, %arg3: memref<256x128xf32, #tpu.memory_space<vmem>>, %arg4: memref<8x128xf32, #tpu.memory_space<vmem>>) attributes {dimension_semantics = [#tpu.dimension_semantics<arbitrary>], iteration_bounds = array<i64: 2>, scalar_prefetch = 0 : i64, scratch_operands = 0 : i64, tpu.core_type = #tpu.core_type<tc>, window_params = [{transform_indices = @transform_0, window_bounds = array<i64: 256, 128>}, {pipeline_mode = #tpu.pipeline_mode<synchronous>, transform_indices = @transform_1, window_bounds = array<i64: 128, 128>}, {transform_indices = @transform_2, window_bounds = array<i64: 256, 128>}, {pipeline_mode = #tpu.pipeline_mode<synchronous>, transform_indices = @transform_3, window_bounds = array<i64: 8, 128>}]} {
    %c0_i32 = arith.constant 0 : i32
    %0 = arith.cmpi eq, %arg0, %c0_i32 : i32
    %1 = arith.extui %0 : i1 to i32
    %c0_i32_0 = arith.constant 0 : i32
    %2 = arith.cmpi ne, %1, %c0_i32_0 : i32
    scf.if %2 {
      %cst_15 = arith.constant 0.000000e+00 : f32
      %18 = vector.broadcast %cst_15 : f32 to vector<8x128xf32>
      %c0_16 = arith.constant 0 : index
      %c0_17 = arith.constant 0 : index
      %19 = vector.load %arg4[%c0_16, %c0_17] : memref<8x128xf32, #tpu.memory_space<vmem>>, vector<8x128xf32>
      tpu.vector_store %arg4[%c0_16, %c0_17], %18 {strides = array<i32>} : memref<8x128xf32, #tpu.memory_space<vmem>>, vector<8x128xf32>,
    } else {
    }
    %c0 = arith.constant 0 : index
    %c0_1 = arith.constant 0 : index
    %3 = vector.load %arg1[%c0, %c0_1] : memref<256x128xbf16, #tpu.memory_space<vmem>>, vector<256x128xbf16>
    %c0_2 = arith.constant 0 : index
    %c0_3 = arith.constant 0 : index
    %4 = vector.load %arg2[%c0_2, %c0_3] : memref<128x128xbf16, #tpu.memory_space<vmem>>, vector<128x128xbf16>
    %cst = arith.constant dense<0.000000e+00> : vector<256x128xf32>
    %5 = tpu.matmul %3, %4, %cst {dimension_numbers = #tpu.dot_dimension_numbers<[1], [0], [0], [1], [0, 0, 1, 1], [], []>} : vector<256x128xbf16>, vector<128x128xbf16>, vector<256x128xf32> -> vector<256x128xf32>
    %c0_4 = arith.constant 0 : index
    %c0_5 = arith.constant 0 : index
    %6 = vector.load %arg3[%c0_4, %c0_5] : memref<256x128xf32, #tpu.memory_space<vmem>>, vector<256x128xf32>
    tpu.vector_store %arg3[%c0_4, %c0_5], %5 {strides = array<i32>} : memref<256x128xf32, #tpu.memory_space<vmem>>, vector<256x128xf32>,
    %c0_6 = arith.constant 0 : index
    %c0_7 = arith.constant 0 : index
    %7 = vector.load %arg4[%c0_6, %c0_7] : memref<8x128xf32, #tpu.memory_space<vmem>>, vector<1x128xf32>
    %cst_8 = arith.constant dense<0.000000e+00> : vector<128xf32>
    %8 = vector.multi_reduction <add>, %5, %cst_8 [0] : vector<256x128xf32> to vector<128xf32>
    %9 = vector.shape_cast %8 : vector<128xf32> to vector<1x128xf32>
    %10 = arith.addf %7, %9 : vector<1x128xf32>
    %c0_9 = arith.constant 0 : index
    %c0_10 = arith.constant 0 : index
    %11 = vector.load %arg4[%c0_9, %c0_10] : memref<8x128xf32, #tpu.memory_space<vmem>>, vector<1x128xf32>
    tpu.vector_store %arg4[%c0_9, %c0_10], %10 {strides = array<i32>} : memref<8x128xf32, #tpu.memory_space<vmem>>, vector<1x128xf32>,
    %c1 = arith.constant 1 : index
    %c0_11 = arith.constant 0 : index
    %12 = vector.load %arg4[%c1, %c0_11] : memref<8x128xf32, #tpu.memory_space<vmem>>, vector<1x128xf32>
    %13 = arith.mulf %5, %5 : vector<256x128xf32>
    %cst_12 = arith.constant dense<0.000000e+00> : vector<128xf32>
    %14 = vector.multi_reduction <add>, %13, %cst_12 [0] : vector<256x128xf32> to vector<128xf32>
    %15 = vector.shape_cast %14 : vector<128xf32> to vector<1x128xf32>
    %16 = arith.addf %12, %15 : vector<1x128xf32>
    %c1_13 = arith.constant 1 : index
    %c0_14 = arith.constant 0 : index
    %17 = vector.load %arg4[%c1_13, %c0_14] : memref<8x128xf32, #tpu.memory_space<vmem>>, vector<1x128xf32>
    tpu.vector_store %arg4[%c1_13, %c0_14], %16 {strides = array<i32>} : memref<8x128xf32, #tpu.memory_space<vmem>>, vector<1x128xf32>,
    return
  }
  func.func @transform_0(%arg0: i32) -> (i32, i32) {
    %c0_i32 = arith.constant 0 : i32
    %c0_i32_0 = arith.constant 0 : i32
    return %arg0, %c0_i32 : i32, i32
  }
  func.func @transform_1(%arg0: i32) -> (i32, i32) {
    %c0_i32 = arith.constant 0 : i32
    %c0_i32_0 = arith.constant 0 : i32
    %c0_i32_1 = arith.constant 0 : i32
    return %c0_i32, %c0_i32_0 : i32, i32
  }
  func.func @transform_2(%arg0: i32) -> (i32, i32) {
    %c0_i32 = arith.constant 0 : i32
    %c0_i32_0 = arith.constant 0 : i32
    return %arg0, %c0_i32 : i32, i32
  }
  func.func @transform_3(%arg0: i32) -> (i32, i32) {
    %c0_i32 = arith.constant 0 : i32
    %c0_i32_0 = arith.constant 0 : i32
    %c0_i32_1 = arith.constant 0 : i32
    return %c0_i32, %c0_i32_0 : i32, i32
  }
}

</mosaic_0001>

<bundles_post_ra>
// kernel: tpu_custom_call.1
= control target key start
LH: loop header
LB: loop body
LE: loop exit
PB: predicated region body
PF: predicated region fallthrough
CT: control target
= control target key end

     0   :  { %9 = vsyncpa [#allocation3], 0  ;;  %s1581_s0 = inlined_call_operand.hbm [shape: bf16[512,128], index: 0, kind: input, shape index: {}]   ;;  %s1582_s1 = inlined_call_operand.hbm [shape: bf16[128,128], index: 1, kind: input, shape index: {}]   ;;  %s1583_s2 = inlined_call_operand.hbm [shape: f32[512,128], index: 2, kind: output, shape index: {0}]   ;;  %s1584_s3 = inlined_call_operand.hbm [shape: f32[8,128], index: 3, kind: output, shape index: {1}]  }
   0x1   :  { %11 = vsyncpa [#allocation3 + $0x1], 0 }
   0x2   :  { %12 = vsyncpa [#allocation6], 0 }
   0x3   :  { %13 = vsyncpa [#allocation4], 0 }
   0x4   :  { %15 = vsyncpa [#allocation4 + $0x1], 0 }
   0x5   :  { %16 = vsyncpa [#allocation9], 0  ;;  %s1234_s12 = smov 0   ;;  %s1236_s13 = smov 0  }
   0x6   :  { %s1238_s14 = smov 0   ;;  %s1240_s15 = smov 0  }
   0x7 LB: > { %s1255_s16 = sadd.s32 4294967295, %s1203_s15   ;;  %s827_s17 = sadd.s32 4294967294, %s1203_s15   ;;  %s1203_s15 = sphi %s1240_s15, %s1611_s15   ;;  %s1199_s14 = sphi %s1238_s14, %s1610_s14   ;;  %s1195_s13 = sphi %s1236_s13, %s1609_s13   ;;  %s1191_s12 = sphi %s1234_s12, %s1608_s12  }
   0x8   : > { %p42_p0 = scmp.ne.s32.totalorder %s1195_s13, %s1191_s12  ;;  %p1585_p1 = scmp.eq.s32.totalorder %s1255_s16, 0 }
   0x9   : > { %p93_p3 = scmp.eq.s32.totalorder %s827_s17, 1  ;;  %p828_p5 = scmp.ge.s32.totalorder %s1203_s15, 1 }
   0xa   : > { %p1264_p4 = por %p1585_p1, %p42_p0  ;;  %p121_p7 = scmp.lt.s32.totalorder %s1203_s15, 3 }
   0xb   : > { %p1269_p6 = por %p93_p3, %p42_p0  ;;  %s1205_s21 = smov [#allocation5]  }
   0xc   : > { %s1589_s18 = scalar_select %p1264_p4, 1, 0 }
   0xd   : > { %s1590_s19 = scalar_select %p1269_p6, 1, 0 }
   0xe   : > { %p1275_p9 = pnand %p828_p5, %p121_p7  ;;  %s133_s22 = sshll.u32 %s1205_s21, 4  ;;  %s134_s22 = int_to_ptr.vmem [resolvable:$true] %s133_s22 }
   0xf   : > { %s1289_s24 = sadd.s32 1, %s1203_s15   ;;  %s29_s25 = sadd.s32 1, %s1199_s14 }
  0x10   : > { %s1591_s20 = scalar_select %p1275_p9, 1, 0 }
  0x11   : > { %p972_p10 = pneg %p1275_p9  ;;  %s26_s26 = ssub.s32 %s1203_s15, %s1289_s24 }
  0x12   : > { %s1064_s27 = scalar_lea.vmem %s134_s22, 1024  ;;  %p1072_p7 = scmp.lt.s32.totalorder %s134_s22, %s134_s22 }
  0x13   : > { %p1284_p12 = pnand %p972_p10, %p1585_p1  ;;  %p1065_p0 = scmp.ne.s32.totalorder %s134_s22, %s1064_s27 }
  0x14   : > { %p1073_p8 = scmp.lt.s32.totalorder %s1064_s27, %s1064_s27 }
  0x15   : > { %p1055_p13 = pneg %p1284_p12 }
  0x16   : > { %p1074_p11 = por %p1073_p8, %p1072_p7 }
  0x17   : > { %p1067_p3 = pnand %p1065_p0, %p1055_p13 }
  0x19   : > { %p1068_p5 = pneg %p1067_p3 }
  0x1b   : > { %p1075_p2 = pnand %p1074_p11, %p1068_p5 }
  0x1d   : > { %1078 = shalt.err (!%p1075_p2)
}
  0x1e   : > { %s1206_s28 = smov 64   ;;  %s1207_s29 = smov 4  }
  0x1f   : > { %975 = dma.hbm_to_vmem [thread:$0]  (!%p1284_p12), %s1582_s1, 1024, %s134_s22, [#allocation6], %s1206_s28, %s1206_s28, %s1207_s29  }
  0x20   : > { %p27_p2 = scmp.eq.s32.totalorder %s26_s26, 0  ;;  %p36_p8 = scmp.ne.s32.totalorder %s1199_s14, %s1195_s13 }
  0x21   : > { %p37_p10 = scmp.eq.s32.totalorder %s1203_s15, 0  ;;  %p985_p11 = scmp.lt.s32.totalorder %s1203_s15, 2 }
  0x22   : > { %s1309_s5 = scalar_select %p27_p2, %s1199_s14, %s29_s25  }
  0x23   : > { %p38_p13 = por %p37_p10, %p36_p8  ;;  %p1593_p0 = scmp.eq.s32.totalorder %s1255_s16, 1 }
  0x24   : > { %s147_s7 = sand.u32 1, %s1199_s14   ;;  %s870_s8 = sshll.u32 %s1203_s15, 11 }
  0x25   : > { %p1313_p3 = por %p1593_p0, %p36_p8  ;;  %s831_s9 = sshll.u32 %s147_s7, 7 }
  0x26   : > { %s1322_s17 = scalar_lea.hbm %s1581_s0, %s870_s8  ;;  %s151_s21 = scalar_lea.vmem [#allocation2], %s831_s9 }
  0x27   : > { %s1594_s6 = scalar_select %p1313_p3, 1, 0 }
  0x28   : > { %s158_s22 = sshll.u32 %s151_s21, 4  ;;  %p1324_p12 = pnand %p985_p11, %p38_p13  ;;  %s1328_s22 = int_to_ptr.vmem [resolvable:$true] %s158_s22 }
  0x29   : > { %s1330_s25 = scalar_lea.sflag [#allocation3], %s147_s7  ;;  %s1079_s26 = scalar_lea.hbm %s1322_s17, 2048 }
  0x2a   : > { %p1080_p5 = scmp.ne.s32.totalorder %s1322_s17, %s1079_s26  ;;  %p1081_p7 = pneg %p1324_p12 }
  0x2b   : > { %s1084_s4 = scalar_lea.hbm %s1581_s0, 4096  ;;  %p1085_p10 = scmp.lt.s32.totalorder %s1322_s17, %s1581_s0 }
  0x2c   : > { %p1082_p2 = pnand %p1081_p7, %p1080_p5  ;;  %p1086_p11 = scmp.lt.s32.totalorder %s1084_s4, %s1079_s26 }
  0x2e   : > { %p1083_p8 = pneg %p1082_p2  ;;  %p1087_p13 = por %p1086_p11, %p1085_p10 }
  0x30   : > { %p1088_p0 = pnand %p1087_p13, %p1083_p8 }
  0x32   : > { %1091 = shalt.err (!%p1088_p0)
}
  0x33   : > { %s1092_s7 = scalar_lea.vmem %s1328_s22, 2048  ;;  %s1208_s10 = smov [#allocation2]  }
  0x34   : > { %p1093_p1 = scmp.ne.s32.totalorder %s1328_s22, %s1092_s7  ;;  %s1097_s11 = sshll.u32 %s1208_s10, 4  ;;  %s1098_s11 = int_to_ptr.vmem [resolvable:$false] %s1097_s11 }
  0x35   : > { %s1099_s21 = scalar_lea.vmem %s1098_s11, 4096  ;;  %p1100_p2 = scmp.lt.s32.totalorder %s1328_s22, %s1098_s11 }
  0x36   : > { %p1095_p6 = pnand %p1093_p1, %p1081_p7  ;;  %p1101_p3 = scmp.lt.s32.totalorder %s1099_s21, %s1092_s7 }
  0x38   : > { %p1096_p5 = pneg %p1095_p6  ;;  %p1102_p4 = por %p1101_p3, %p1100_p2 }
  0x3a   : > { %p1103_p9 = pnand %p1102_p4, %p1096_p5 }
  0x3c   : > { %1106 = shalt.err (!%p1103_p9)
}
  0x3d   : > { %979 = dma.hbm_to_vmem [thread:$0]  (!%p1324_p12), %s1322_s17, 2048, %s1328_s22, %s1330_s25, %s1206_s28, %s1206_s28, %s1207_s29  }
  0x3e   : > { %p1596_p1 = scmp.ne.s32.totalorder %s1591_s20, 0 }
  0x3f   : > { %s1357_s26 = sand.u32 (!%p1596_p1), 1, %s1195_s13   ;;  %p1597_p4 = scmp.ne.s32.totalorder (!%p1596_p1), %s1589_s18, 0 }
  0x40   : > { %170 = sbr.rel (%p1596_p1) target bundleno = 411 (0x19b), region = 28  ;;  %s835_s27 = sshll.u32 (!%p1596_p1), %s1357_s26, 7 }
  0x41   : > { %s173_s30 = scalar_lea.sflag (!%p1596_p1), [#allocation3], %s1357_s26  ;;  %s1361_s4 = scalar_lea.vmem (!%p1596_p1), [#allocation2], %s835_s27 }
  0x45   : > { %1174 = dma.done.wait (%p1597_p4), %s173_s30, 2048  }
  0x46   : > { %1176 = vsyncadd (%p1597_p4), %s173_s30, 4294965248  ;;  %p1598_p6 = scmp.eq.s32.totalorder %s1255_s16, 0 }
  0x48   : > { %1178 = dma.done.wait (%p1598_p6), [#allocation6], 1024   ;;  %p1599_p9 = pmov %p1598_p6 }
  0x49   : > { %s837_s20 = sshll.u32 %s1357_s26, 8  ;;  %p1600_p3 = scmp.ne.s32.totalorder %s1255_s16, 0 }
  0x4a   : > { %1180 = vsyncadd (%p1599_p9), [#allocation6], 4294966272  ;;  %s1372_s28 = scalar_lea.vmem [#allocation7], %s837_s20 }
  0x4b   : > { %209 = sbr.rel (%p1600_p3) target bundleno = 82 (0x52), region = 40 }
  0x50   : > { %v1209_v0 = vmov 0.0  }
  0x51   : > { %210 = vst [vmem:[#allocation8] sm:$0xff] %v1209_v0 }
  0x52 PF: > { %v1029_v1 = vld [vmem:[#allocation5 + $0x38] sm:$0xff]   ;;  %v1030_v2 = vld [vmem:[#allocation5 + $0x30] sm:$0xff]   ;;  %v1031_v3 = vld [vmem:[#allocation5 + $0x28] sm:$0xff]   ;;  %s871_s18 = sshll.u32 %s1255_s16, 12  ;;  %s722_s29 = sshll.u32 %s1372_s28, 4  ;;  %s1471_s29 = int_to_ptr.vmem [resolvable:$true] %s722_s29 }
  0x53   : > { %896 = vmatprep.subr.bf16.mxu0 %v1029_v1  ;;  %944 = vmatprep.subr.bf16.mxu1 %v1029_v1  ;;  %v1032_v4 = vld [vmem:[#allocation5 + $0x20] sm:$0xff]   ;;  %v1033_v6 = vld [vmem:[#allocation5 + $0x18] sm:$0xff]   ;;  %v1034_v7 = vld [vmem:[#allocation5 + $0x10] sm:$0xff]   ;;  %s1469_s23 = scalar_lea.hbm %s1583_s2, %s871_s18  ;;  %s709_s25 = scalar_lea.sflag [#allocation4], %s1357_s26 }
  0x54   : > { %897 = vmatpush3.bf16.msra.mxu0 %v1029_v1  ;;  %952 = vmatpush3.bf16.msra.mxu1 %v1029_v1  ;;  %v1037_v5 = vld [vmem:[%s1361_s4] sm:$0xff]   ;;  %v1035_v9 = vld [vmem:[#allocation5 + $0x8] sm:$0xff]   ;;  %v1039_v13 = vld [vmem:[%s1361_s4 + $0x10] sm:$0xff]   ;;  %s1107_s8 = scalar_lea.vmem %s1471_s29, 4096  ;;  %p1601_p7 = scmp.ne.s32.totalorder %s1594_s6, 0 }
  0x55   : > { %898 = vmatprep.subr.bf16.mxu0 %v1030_v2  ;;  %945 = vmatprep.subr.bf16.mxu1 %v1030_v2  ;;  %v1045_v8 = vld [vmem:[%s1361_s4 + $0x40] sm:$0xff]   ;;  %v1038_v11 = vld [vmem:[%s1361_s4 + $0x8] sm:$0xff]   ;;  %v1047_v14 = vld [vmem:[%s1361_s4 + $0x50] sm:$0xff]   ;;  %p1108_p12 = scmp.ne.s32.totalorder %s1471_s29, %s1107_s8  ;;  %s1210_s9 = smov [#allocation7]  }
  0x56   : > { %912 = vmatprep.mubr.bf16.mxu0 %v1037_v5  ;;  %928 = vmatprep.mubr.bf16.mxu1 %v1045_v8  ;;  %v1036_v10 = vld [vmem:[#allocation5] sm:$0xff]   ;;  %v1046_v12 = vld [vmem:[%s1361_s4 + $0x48] sm:$0xff]   ;;  %v1040_v15 = vld [vmem:[%s1361_s4 + $0x18] sm:$0xff]   ;;  %s1111_s7 = sshll.u32 %s1210_s9, 4  ;;  %s1112_s7 = int_to_ptr.vmem [resolvable:$false] %s1111_s7 }
  0x57   : > { %v1048_v16 = vld [vmem:[%s1361_s4 + $0x58] sm:$0xff]   ;;  %v1041_v17 = vld [vmem:[%s1361_s4 + $0x20] sm:$0xff]   ;;  %v1042_v19 = vld [vmem:[%s1361_s4 + $0x28] sm:$0xff]   ;;  %p1109_p8 = pnand %p1108_p12, %p1601_p7  ;;  %s1113_s10 = scalar_lea.vmem %s1112_s7, 8192 }
  0x58   : > { %899 = vmatpush3.bf16.msra.mxu0 %v1030_v2  ;;  %953 = vmatpush3.bf16.msra.mxu1 %v1030_v2  ;;  %v1049_v18 = vld [vmem:[%s1361_s4 + $0x60] sm:$0xff]   ;;  %v1050_v20 = vld [vmem:[%s1361_s4 + $0x68] sm:$0xff]   ;;  %v1043_v21 = vld [vmem:[%s1361_s4 + $0x30] sm:$0xff]   ;;  %p1114_p11 = scmp.lt.s32.totalorder %s1471_s29, %s1112_s7  ;;  %p1115_p13 = scmp.lt.s32.totalorder %s1113_s10, %s1107_s8 }
  0x59   : > { %900 = vmatprep.subr.bf16.mxu0 %v1031_v3  ;;  %946 = vmatprep.subr.bf16.mxu1 %v1031_v3  ;;  %v1051_v22 = vld [vmem:[%s1361_s4 + $0x70] sm:$0xff]   ;;  %v1044_v23 = vld [vmem:[%s1361_s4 + $0x38] sm:$0xff]   ;;  %p1110_p10 = pneg %p1109_p8 }
  0x5a   : > { %v1052_v24 = vld [vmem:[%s1361_s4 + $0x78] sm:$0xff]   ;;  %p1116_p0 = por %p1115_p13, %p1114_p11 }
  0x5c   : > { %901 = vmatpush3.bf16.msra.mxu0 %v1031_v3  ;;  %954 = vmatpush3.bf16.msra.mxu1 %v1031_v3  ;;  %p1117_p5 = pnand %p1116_p0, %p1110_p10 }
  0x5d   : > { %902 = vmatprep.subr.bf16.mxu0 %v1032_v4  ;;  %947 = vmatprep.subr.bf16.mxu1 %v1032_v4 }
  0x60   : > { %903 = vmatpush3.bf16.msra.mxu0 %v1032_v4  ;;  %955 = vmatpush3.bf16.msra.mxu1 %v1032_v4 }
  0x61   : > { %904 = vmatprep.subr.bf16.mxu0 %v1033_v6  ;;  %948 = vmatprep.subr.bf16.mxu1 %v1033_v6 }
  0x64   : > { %905 = vmatpush3.bf16.msra.mxu0 %v1033_v6  ;;  %956 = vmatpush3.bf16.msra.mxu1 %v1033_v6 }
  0x65   : > { %906 = vmatprep.subr.bf16.mxu0 %v1034_v7  ;;  %949 = vmatprep.subr.bf16.mxu1 %v1034_v7 }
  0x68   : > { %907 = vmatpush3.bf16.msra.mxu0 %v1034_v7  ;;  %957 = vmatpush3.bf16.msra.mxu1 %v1034_v7 }
  0x69   : > { %908 = vmatprep.subr.bf16.mxu0 %v1035_v9  ;;  %950 = vmatprep.subr.bf16.mxu1 %v1035_v9 }
  0x6c   : > { %909 = vmatpush3.bf16.msra.mxu0 %v1035_v9  ;;  %958 = vmatpush3.bf16.msra.mxu1 %v1035_v9 }
  0x6d   : > { %910 = vmatprep.subr.bf16.mxu0 %v1036_v10  ;;  %951 = vmatprep.subr.bf16.mxu1 %v1036_v10 }
  0x70   : > { %911 = vmatpush3.bf16.msra.mxu0 %v1036_v10  ;;  %959 = vmatpush3.bf16.msra.mxu1 %v1036_v10 }
  0x73   : > { %913 = vmatmul.mubr.bf16.vlgmr.msra.gmra.mxu0 %v1038_v11  ;;  %929 = vmatmul.mubr.bf16.vlgmr.msra.gmra.mxu1 %v1046_v12 }
  0x74   : > { %916 = vmatprep.mubr.bf16.mxu0 %v1039_v13  ;;  %932 = vmatprep.mubr.bf16.mxu1 %v1047_v14 }
  0x7b   : > { %917 = vmatmul.mubr.bf16.gmra.mxu0 %v1040_v15  ;;  %933 = vmatmul.mubr.bf16.gmra.mxu1 %v1048_v16 }
  0x7c   : > { %920 = vmatprep.mubr.bf16.mxu0 %v1041_v17  ;;  %936 = vmatprep.mubr.bf16.mxu1 %v1049_v18 }
  0x83   : > { %921 = vmatmul.mubr.bf16.gmra.mxu0 %v1042_v19  ;;  %937 = vmatmul.mubr.bf16.gmra.mxu1 %v1050_v20 }
  0x84   : > { %924 = vmatprep.mubr.bf16.mxu0 %v1043_v21  ;;  %940 = vmatprep.mubr.bf16.mxu1 %v1051_v22 }
  0x8b   : > { %925 = vmatmul.mubr.bf16.gmra.mxu0 %v1044_v23  ;;  %941 = vmatmul.mubr.bf16.gmra.mxu1 %v1052_v24 }
 0x133   : > { %v914_v25 = vpop.f32.mrf.mxu0  ;;  %v1392_v26 = vpop.f32.mrf.mxu1 }
 0x134   : > { %566 = vst [vmem:[%s1372_s28 + $0x10] sm:$0xff] %v914_v25  ;;  %582 = vst [vmem:[%s1372_s28 + $0x90] sm:$0xff] %v1392_v26  ;;  %v639_v38 = vmul.f32 %v914_v25, %v914_v25 }
 0x135   : > { %v437_v27 = vpop.f32.mrf.mxu0  ;;  %v1397_v28 = vpop.f32.mrf.mxu1 }
 0x136   : > { %564 = vst [vmem:[%s1372_s28] sm:$0xff] %v437_v27  ;;  %580 = vst [vmem:[%s1372_s28 + $0x80] sm:$0xff] %v1397_v28  ;;  %v637_v33 = vmul.f32 %v437_v27, %v437_v27 }
 0x137   : > { %v915_v29 = vpop.f32.mrf.mxu0  ;;  %v1402_v30 = vpop.f32.mrf.mxu1 }
 0x138   : > { %567 = vst [vmem:[%s1372_s28 + $0x18] sm:$0xff] %v915_v29  ;;  %583 = vst [vmem:[%s1372_s28 + $0x98] sm:$0xff] %v1402_v30  ;;  %v640_v43 = vmul.f32 %v915_v29, %v915_v29 }
 0x139   : > { %v440_v31 = vpop.f32.mrf.mxu0  ;;  %v1407_v32 = vpop.f32.mrf.mxu1 }
 0x13a   : > { %565 = vst [vmem:[%s1372_s28 + $0x8] sm:$0xff] %v440_v31  ;;  %v597_v34 = vadd.f32 %v440_v31, %v437_v27  ;;  %v638_v35 = vmul.f32 %v440_v31, %v440_v31  ;;  %581 = vst [vmem:[%s1372_s28 + $0x88] sm:$0xff] %v1407_v32 }
 0x13b   : > { %v918_v36 = vpop.f32.mrf.mxu0  ;;  %v1412_v37 = vpop.f32.mrf.mxu1 }
 0x13c   : > { %v598_v39 = vadd.f32 %v914_v25, %v597_v34  ;;  %v669_v40 = vadd.f32 %v638_v35, %v637_v33  ;;  %570 = vst [vmem:[%s1372_s28 + $0x30] sm:$0xff] %v918_v36  ;;  %586 = vst [vmem:[%s1372_s28 + $0xb0] sm:$0xff] %v1412_v37  ;;  %v643_v58 = vmul.f32 %v918_v36, %v918_v36 }
 0x13d   : > { %v453_v41 = vpop.f32.mrf.mxu0  ;;  %v1417_v42 = vpop.f32.mrf.mxu1 }
 0x13e   : > { %v670_v44 = vadd.f32 %v669_v40, %v639_v38  ;;  %568 = vst [vmem:[%s1372_s28 + $0x20] sm:$0xff] %v453_v41  ;;  %v599_v45 = vadd.f32 %v915_v29, %v598_v39  ;;  %584 = vst [vmem:[%s1372_s28 + $0xa0] sm:$0xff] %v1417_v42  ;;  %v641_v49 = vmul.f32 %v453_v41, %v453_v41 }
 0x13f   : > { %v919_v46 = vpop.f32.mrf.mxu0  ;;  %v1422_v47 = vpop.f32.mrf.mxu1 }
 0x140   : > { %v600_v48 = vadd.f32 %v599_v45, %v453_v41  ;;  %v671_v50 = vadd.f32 %v670_v44, %v640_v43  ;;  %571 = vst [vmem:[%s1372_s28 + $0x38] sm:$0xff] %v919_v46  ;;  %587 = vst [vmem:[%s1372_s28 + $0xb8] sm:$0xff] %v1422_v47  ;;  %v644_v63 = vmul.f32 %v919_v46, %v919_v46 }
 0x141   : > { %v456_v51 = vpop.f32.mrf.mxu0  ;;  %v1427_v52 = vpop.f32.mrf.mxu1 }
 0x142   : > { %v672_v53 = vadd.f32 %v671_v50, %v641_v49  ;;  %569 = vst [vmem:[%s1372_s28 + $0x28] sm:$0xff] %v456_v51  ;;  %v601_v54 = vadd.f32 %v600_v48, %v456_v51  ;;  %v642_v55 = vmul.f32 %v456_v51, %v456_v51  ;;  %585 = vst [vmem:[%s1372_s28 + $0xa8] sm:$0xff] %v1427_v52 }
 0x143   : > { %v922_v56 = vpop.f32.mrf.mxu0  ;;  %v1432_v57 = vpop.f32.mrf.mxu1 }
 0x144   : > { %v602_v59 = vadd.f32 %v918_v36, %v601_v54  ;;  %v673_v60 = vadd.f32 %v672_v53, %v642_v55  ;;  %574 = vst [vmem:[%s1372_s28 + $0x50] sm:$0xff] %v922_v56  ;;  %590 = vst [vmem:[%s1372_s28 + $0xd0] sm:$0xff] %v1432_v57  ;;  %v647_v14 = vmul.f32 %v922_v56, %v922_v56 }
 0x145   : > { %v469_v61 = vpop.f32.mrf.mxu0  ;;  %v1437_v62 = vpop.f32.mrf.mxu1 }
 0x146   : > { %v674_v0 = vadd.f32 %v673_v60, %v643_v58  ;;  %572 = vst [vmem:[%s1372_s28 + $0x40] sm:$0xff] %v469_v61  ;;  %v603_v1 = vadd.f32 %v919_v46, %v602_v59  ;;  %588 = vst [vmem:[%s1372_s28 + $0xc0] sm:$0xff] %v1437_v62  ;;  %v645_v5 = vmul.f32 %v469_v61, %v469_v61 }
 0x147   : > { %v923_v2 = vpop.f32.mrf.mxu0  ;;  %v1442_v3 = vpop.f32.mrf.mxu1 }
 0x148   : > { %v604_v4 = vadd.f32 %v603_v1, %v469_v61  ;;  %v675_v6 = vadd.f32 %v674_v0, %v644_v63  ;;  %575 = vst [vmem:[%s1372_s28 + $0x58] sm:$0xff] %v923_v2  ;;  %591 = vst [vmem:[%s1372_s28 + $0xd8] sm:$0xff] %v1442_v3  ;;  %v648_v19 = vmul.f32 %v923_v2, %v923_v2 }
 0x149   : > { %v472_v7 = vpop.f32.mrf.mxu0  ;;  %v1447_v8 = vpop.f32.mrf.mxu1 }
 0x14a   : > { %v676_v9 = vadd.f32 %v675_v6, %v645_v5  ;;  %573 = vst [vmem:[%s1372_s28 + $0x48] sm:$0xff] %v472_v7  ;;  %v605_v10 = vadd.f32 %v604_v4, %v472_v7  ;;  %v646_v11 = vmul.f32 %v472_v7, %v472_v7  ;;  %589 = vst [vmem:[%s1372_s28 + $0xc8] sm:$0xff] %v1447_v8 }
 0x14b   : > { %v926_v12 = vpop.f32.mrf.mxu0  ;;  %v1452_v13 = vpop.f32.mrf.mxu1 }
 0x14c   : > { %v606_v15 = vadd.f32 %v922_v56, %v605_v10  ;;  %v677_v16 = vadd.f32 %v676_v9, %v646_v11  ;;  %578 = vst [vmem:[%s1372_s28 + $0x70] sm:$0xff] %v926_v12  ;;  %594 = vst [vmem:[%s1372_s28 + $0xf0] sm:$0xff] %v1452_v13 }
 0x14d   : > { %v485_v17 = vpop.f32.mrf.mxu0  ;;  %v1459_v18 = vpop.f32.mrf.mxu1 }
 0x14e   : > { %v678_v20 = vadd.f32 %v677_v16, %v647_v14  ;;  %576 = vst [vmem:[%s1372_s28 + $0x60] sm:$0xff] %v485_v17  ;;  %v607_v21 = vadd.f32 %v923_v2, %v606_v15  ;;  %592 = vst [vmem:[%s1372_s28 + $0xe0] sm:$0xff] %v1459_v18  ;;  %v649_v25 = vmul.f32 %v485_v17, %v485_v17 }
 0x14f   : > { %v927_v22 = vpop.f32.mrf.mxu0  ;;  %v1464_v23 = vpop.f32.mrf.mxu1 }
 0x150   : > { %v608_v24 = vadd.f32 %v607_v21, %v485_v17  ;;  %v679_v27 = vadd.f32 %v678_v20, %v648_v19  ;;  %579 = vst [vmem:[%s1372_s28 + $0x78] sm:$0xff] %v927_v22  ;;  %595 = vst [vmem:[%s1372_s28 + $0xf8] sm:$0xff] %v1464_v23 }
 0x151   : > { %v488_v29 = vpop.f32.mrf.mxu0  ;;  %v1476_v31 = vpop.f32.mrf.mxu1 }
 0x152   : > { %v680_v33 = vadd.f32 %v679_v27, %v649_v25  ;;  %577 = vst [vmem:[%s1372_s28 + $0x68] sm:$0xff] %v488_v29  ;;  %v609_v34 = vadd.f32 %v608_v24, %v488_v29  ;;  %v650_v35 = vmul.f32 %v488_v29, %v488_v29  ;;  %593 = vst [vmem:[%s1372_s28 + $0xe8] sm:$0xff] %v1476_v31 }
 0x153   : > { %1120 = shalt.err (!%p1117_p5)
}
 0x154   : > { %s1121_s11 = scalar_lea.hbm %s1469_s23, 4096  ;;  %s1125_s30 = scalar_lea.hbm %s1583_s2, 8192 }
 0x155   : > { %p1122_p2 = scmp.ne.s32.totalorder %s1469_s23, %s1121_s11  ;;  %p1126_p6 = scmp.lt.s32.totalorder %s1469_s23, %s1583_s2 }
 0x156   : > { %p1127_p9 = scmp.lt.s32.totalorder %s1125_s30, %s1121_s11 }
 0x157   : > { %p1123_p1 = pnand %p1122_p2, %p1601_p7 }
 0x158   : > { %p1128_p3 = por %p1127_p9, %p1126_p6 }
 0x159   : > { %p1124_p4 = pneg %p1123_p1 }
 0x15b   : > { %p1129_p12 = pnand %p1128_p3, %p1124_p4 }
 0x15d   : > { %1132 = shalt.err (!%p1129_p12)
}
 0x15e   : > { %s1211_s28 = smov 128   ;;  %s1212_s18 = smov 8   ;;  %v651_v36 = vmul.f32 %v926_v12, %v926_v12  ;;  %v610_v38 = vadd.f32 %v926_v12, %v609_v34  ;;  %v681_v39 = vadd.f32 %v680_v33, %v650_v35  ;;  %v652_v40 = vmul.f32 %v927_v22, %v927_v22 }
 0x15f   : > { %966 = dma.vmem_to_hbm [thread:$0]  (%p1601_p7), %s1471_s29, 4096, %s1469_s23, %s709_s25, %s1211_s28, %s1211_s28, %s1212_s18   ;;  %v653_v44 = vmul.f32 %v1397_v28, %v1397_v28  ;;  %v654_v49 = vmul.f32 %v1407_v32, %v1407_v32  ;;  %v655_v51 = vmul.f32 %v1392_v26, %v1392_v26  ;;  %v656_v55 = vmul.f32 %v1402_v30, %v1402_v30 }
 0x160   : > { %v611_v41 = vadd.f32 %v927_v22, %v610_v38  ;;  %v682_v43 = vadd.f32 %v681_v39, %v651_v36  ;;  %v657_v59 = vmul.f32 %v1417_v42, %v1417_v42  ;;  %v658_v63 = vmul.f32 %v1427_v52, %v1427_v52  ;;  %v596_v39 = vld [vmem:[#allocation8] sm:$0x1]  ;;  %s1213_s6 = smov [#allocation8]   ;;  %p1602_p8 = scmp.eq.s32.totalorder %s1255_s16, 1 }
 0x161   : > { %v661_v5 = vmul.f32 %v1437_v62, %v1437_v62  ;;  %v662_v9 = vmul.f32 %v1447_v8, %v1447_v8  ;;  %v665_v15 = vmul.f32 %v1459_v18, %v1459_v18  ;;  %v666_v19 = vmul.f32 %v1476_v31, %v1476_v31  ;;  %s736_s26 = sshll.u32 %s1213_s6, 4  ;;  %s737_s26 = int_to_ptr.vmem [resolvable:$true] %s736_s26 }
 0x162   : > { %v683_v45 = vadd.f32 %v682_v43, %v652_v40  ;;  %v612_v46 = vadd.f32 %v611_v41, %v1397_v28  ;;  %v636_v41 = vld [vmem:[#allocation8 + $0x1] sm:$0x1]  ;;  %s1133_s29 = scalar_lea.vmem %s737_s26, 128  ;;  %p1140_p13 = scmp.lt.s32.totalorder %s737_s26, %s737_s26 }
 0x163   : > { %p1134_p7 = scmp.ne.s32.totalorder %s737_s26, %s1133_s29  ;;  %p1141_p0 = scmp.lt.s32.totalorder %s1133_s29, %s1133_s29 }
 0x164   : > { %v613_v48 = vadd.f32 %v612_v46, %v1407_v32  ;;  %v684_v50 = vadd.f32 %v683_v45, %v653_v44 }
 0x165   : > { %p1135_p10 = pnand %p1134_p7, %p1602_p8  ;;  %p1142_p5 = por %p1141_p0, %p1140_p13 }
 0x166   : > { %v614_v53 = vadd.f32 %v1392_v26, %v613_v48  ;;  %v685_v54 = vadd.f32 %v684_v50, %v654_v49  ;;  %v659_v26 = vmul.f32 %v1412_v37, %v1412_v37 }
 0x167   : > { %p1136_p11 = pneg %p1135_p10 }
 0x168   : > { %v686_v56 = vadd.f32 %v685_v54, %v655_v51  ;;  %v615_v58 = vadd.f32 %v1402_v30, %v614_v53  ;;  %v660_v30 = vmul.f32 %v1422_v47, %v1422_v47 }
 0x169   : > { %p1143_p2 = pnand %p1142_p5, %p1136_p11 }
 0x16a   : > { %v616_v28 = vadd.f32 %v615_v58, %v1417_v42  ;;  %v687_v60 = vadd.f32 %v686_v56, %v656_v55 }
 0x16c   : > { %v688_v32 = vadd.f32 %v687_v60, %v657_v59  ;;  %v617_v61 = vadd.f32 %v616_v28, %v1427_v52 }
 0x16e   : > { %v618_v0 = vadd.f32 %v1412_v37, %v617_v61  ;;  %v689_v1 = vadd.f32 %v688_v32, %v658_v63  ;;  %v663_v37 = vmul.f32 %v1432_v57, %v1432_v57 }
 0x170   : > { %v690_v2 = vadd.f32 %v689_v1, %v659_v26  ;;  %v619_v4 = vadd.f32 %v1422_v47, %v618_v0  ;;  %v664_v47 = vmul.f32 %v1442_v3, %v1442_v3 }
 0x172   : > { %v620_v42 = vadd.f32 %v619_v4, %v1437_v62  ;;  %v691_v6 = vadd.f32 %v690_v2, %v660_v30 }
 0x174   : > { %v692_v7 = vadd.f32 %v691_v6, %v661_v5  ;;  %v621_v52 = vadd.f32 %v620_v42, %v1447_v8 }
 0x176   : > { %v622_v10 = vadd.f32 %v1432_v57, %v621_v52  ;;  %v693_v11 = vadd.f32 %v692_v7, %v662_v9  ;;  %v667_v57 = vmul.f32 %v1452_v13, %v1452_v13 }
 0x178   : > { %v694_v12 = vadd.f32 %v693_v11, %v663_v37  ;;  %v623_v14 = vadd.f32 %v1442_v3, %v622_v10  ;;  %v668_v3 = vmul.f32 %v1464_v23, %v1464_v23 }
 0x17a   : > { %v624_v62 = vadd.f32 %v623_v14, %v1459_v18  ;;  %v695_v16 = vadd.f32 %v694_v12, %v664_v47 }
 0x17c   : > { %v696_v17 = vadd.f32 %v695_v16, %v665_v15  ;;  %v625_v8 = vadd.f32 %v624_v62, %v1476_v31 }
 0x17e   : > { %v626_v20 = vadd.f32 %v1452_v13, %v625_v8  ;;  %v697_v21 = vadd.f32 %v696_v17, %v666_v19 }
 0x180   : > { %v627_v22 = vadd.f32 %v1464_v23, %v626_v20  ;;  %v698_v24 = vadd.f32 %v697_v21, %v667_v57 }
 0x182   : > { %v628_v18 = vrot.slane %v627_v22, 4  ;;  %v699_v25 = vadd.f32 %v698_v24, %v668_v3 }
 0x184   : > { %v629_v27 = vadd.f32 %v628_v18, %v627_v22  ;;  %v700_v29 = vrot.slane %v699_v25, 4 }
 0x186   : > { %v630_v33 = vrot.slane %v629_v27, 2  ;;  %v701_v34 = vadd.f32 %v700_v29, %v699_v25 }
 0x188   : > { %v631_v35 = vadd.f32 %v630_v33, %v629_v27  ;;  %v702_v31 = vrot.slane %v701_v34, 2 }
 0x18a   : > { %v632_v36 = vrot.slane %v631_v35, 1  ;;  %v703_v38 = vadd.f32 %v702_v31, %v701_v34 }
 0x18c   : > { %v633_v13 = vadd.f32 %v632_v36, %v631_v35  ;;  %v704_v40 = vrot.slane %v703_v38, 1 }
 0x18e   : > { %v634_v43 = vadd.f32 %v633_v13, %v596_v39  ;;  %v705_v23 = vadd.f32 %v704_v40, %v703_v38 }
 0x190   : > { %635 = vst [vmem:[#allocation8] sm:$0x1] %v634_v43  ;;  %v706_v44 = vadd.f32 %v705_v23, %v636_v41 }
 0x192   : > { %707 = vst [vmem:[#allocation8 + $0x1] sm:$0x1] %v706_v44 }
 0x193   : > { %1146 = shalt.err (!%p1143_p2)
}
 0x194   : > { %p1603_p1 = pmov %p1602_p8 }
 0x196   : > { %968 = dma.vmem_to_hbm [thread:$0]  (%p1603_p1), %s737_s26, 128, %s1584_s3, [#allocation9]  }
 0x197   : > { %p1604_p4 = pmov %p1603_p1 }
 0x198   : > { %p1605_p6 = pmov %p1603_p1 }
 0x199   : > { %1182 = dma.done.wait (%p1604_p4), [#allocation9], 128  }
 0x19a   : > { %1184 = vsyncadd (%p1605_p6), [#allocation9], 4294967168 }
 0x19b PF: > { %s752_s23 = sand.u32 1, %s1191_s12   ;;  %p1606_p9 = scmp.ne.s32.totalorder %s1590_s19, 0 }
 0x19c   : > { %p1607_p3 = scmp.ge.s32.totalorder %s1203_s15, 2  ;;  %s753_s25 = scalar_lea.sflag [#allocation4], %s752_s23 }
 0x19e   : > { %p981_p12 = pnand %p1607_p3, %p1606_p9 }
 0x1a0   : > { %p982_p7 = pneg %p981_p12 }
 0x1a2   : > { %1186 = dma.done.wait (%p982_p7), %s753_s25, 4096  }
 0x1a3   : > { %1188 = vsyncadd (%p982_p7), %s753_s25, 4294963200  ;;  %p19_p8 = scmp.ge.s32.totalorder %s1289_s24, 4   ;;  %s1608_s12 = smov %s1195_s13 }
 0x1a4   : > { %s1609_s13 = smov %s1199_s14  ;;  %s1610_s14 = smov %s1309_s5 }
 0x1a5   : > { %s1611_s15 = smov %s1289_s24  ;;  %21 = sbr.rel (!%p19_p8) target bundleno = 7 (0x7), region = 89 }
 0x1aa   :  { %758 = vsyncpa [#allocation3], 1 }
 0x1ab   :  { %760 = vsyncpa [#allocation3 + $0x1], 1 }
 0x1ac   :  { %761 = vsyncpa [#allocation6], 1 }
 0x1ad   :  { %762 = vsyncpa [#allocation4], 1 }
 0x1ae   :  { %764 = vsyncpa [#allocation4 + $0x1], 1 }
 0x1af   :  { %765 = vsyncpa [#allocation9], 1 }

</bundles_post_ra>
